<compile_context>
chip_gen: v7x
topology: tpu7x:2x2x1
jax: 0.10.0
libtpu: 0.0.40
codegen_flags: <defaults>
</compile_context>

<pallas_src>
import numpy as np
import jax
import jax.numpy as jnp
from jax.experimental import pallas as pl
from jax.experimental.pallas import tpu as pltpu

_EPS = 1e-5


# -------------------- banded-weight construction (host-side, done once) -------------------- #

def _banded_from_col_taps(col_taps, wb, cc, co):
    """col_taps: {col_block_shift: (cc, co) weights} -> banded (wb*cc, wb*co) matrix.

    Input column block `iw` contributes to output column block `ow` with weight
    col_taps[iw - ow]; out-of-range blocks (left/right zero padding) are simply omitted.
    """
    band = np.zeros((wb * cc, wb * co), np.float32)
    for shift, w in col_taps.items():
        for ow in range(wb):
            iw = ow + shift
            if 0 <= iw < wb:
                band[iw * cc:(iw + 1) * cc, ow * co:(ow + 1) * co] = w
    return band


def _conv3x3_bands(w_hwio, wb):
    """3x3 stride-1 conv -> (3, wb*cin, wb*cout); band t is applied with row shift t-1."""
    return np.stack([
        _banded_from_col_taps({kw - 1: w_hwio[kh, kw] for kw in range(3)},
                              wb, w_hwio.shape[2], w_hwio.shape[3])
        for kh in range(3)])


def _conv3x3_stride2_bands(w_hwio, wb):
    """3x3 stride-2 conv over the space-to-depth block layout
    (column = ow*4*cin + (dr*2+dc)*cin + ci) -> (2, wb*4*cin, wb*cout);
    band t is applied with block-row shift t-1 (t in {0, 1})."""
    cin, cout = w_hwio.shape[2], w_hwio.shape[3]

    def tap(r, c):
        w = np.zeros((4 * cin, cout), np.float32)
        for dr in range(2):
            kh = 2 * r + dr + 1
            if not 0 <= kh <= 2:
                continue
            for dc in range(2):
                kw = 2 * c + dc + 1
                if not 0 <= kw <= 2:
                    continue
                o = (dr * 2 + dc) * cin
                w[o:o + cin] = w_hwio[kh, kw]
        return w

    return np.stack([
        _banded_from_col_taps({-1: tap(r, -1), 0: tap(r, 0)}, wb, 4 * cin, cout)
        for r in (-1, 0)])


def _pad_constant_shortcut_matrix(cin, cout, wb):
    """x[:, ::2, ::2, :] + channel zero-pad, over the space-to-depth layout -> (wb*4*cin, wb*cout)."""
    p = cout // 4
    sel = np.zeros((4 * cin, cout), np.float32)
    sel[np.arange(cin), p + np.arange(cin)] = 1.0          # pixel (dr=0, dc=0), channel ci -> p+ci
    return _banded_from_col_taps({0: sel}, wb, 4 * cin, cout)


# --------------------------------------- kernel -------------------------------------------- #

def _make_kernel(*, h_out, w_out, cc, c, pad_top, pad_bot, identity_sc):
    wcc, wc = w_out * cc, w_out * c

    def kernel(x_ref, w1_ref, b1_ref, w2_ref, b2_ref, *rest):
        if identity_sc:
            (o_ref,) = rest
        else:
            scm_ref, o_ref = rest

        nt = x_ref.shape[0]
        m = nt * h_out
        x3 = x_ref[...].astype(jnp.float32)                        # (nt, h_in, wcc)

        # ---- conv1 (+ folded bn1 scale) + relu: banded MXU matmuls over row-shifted slices ----
        zr = jnp.zeros((nt, 1, wcc), jnp.float32)
        ap1 = jnp.concatenate([zr] * pad_top + [x3] + [zr] * pad_bot, axis=1)
        acc = jnp.zeros((m, wc), jnp.float32)
        for t in range(w1_ref.shape[0]):                           # 3 taps (stride 1) / 2 (stride 2)
            sl = ap1[:, t:t + h_out, :].reshape(m, wcc).astype(jnp.bfloat16)
            acc = acc + jnp.dot(sl, w1_ref[t], preferred_element_type=jnp.float32)
        o1 = jnp.maximum(acc + b1_ref[...], 0.0)                   # (m, wc) f32

        # ---- conv2 (+ folded bn2 scale): 3 banded matmuls; shortcut fused into accumulator ----
        zr2 = jnp.zeros((nt, 1, wc), jnp.float32)
        ap2 = jnp.concatenate([zr2, o1.reshape(nt, h_out, wc), zr2], axis=1)
        if identity_sc:
            acc = x3.reshape(m, wc)                                # identity shortcut
        else:
            acc = jnp.dot(x3.reshape(m, wcc).astype(jnp.bfloat16), scm_ref[...],
                          preferred_element_type=jnp.float32)      # pad_constant shortcut
        for t in range(3):
            sl = ap2[:, t:t + h_out, :].reshape(m, wc).astype(jnp.bfloat16)
            acc = acc + jnp.dot(sl, w2_ref[t], preferred_element_type=jnp.float32)

        out = jnp.maximum(acc + b2_ref[...], 0.0)
        # TODO(synk): when w_out*c < 128 (small stride-2 heads) pack rows so the final store is a
        #             full 128-lane vst instead of a masked 64-lane store.
        o_ref[...] = out.reshape(nt, h_out, wc).astype(o_ref.dtype)

    return kernel


# --------------------------------------- wrapper -------------------------------------------- #

def _pick_nt(n, h_out, target_m=256):
    """Images per grid step: fill the MXU M dimension (~256 rows) while keeping >= 2 grid steps
    when the batch allows (v7x has 2 TensorCores) and dividing N evenly."""
    nt = max(1, min(n, pl.cdiv(target_m, h_out)))
    if n // nt < 2 and n >= 2:
        nt = pl.cdiv(n, 2)
    while n % nt:
        nt -= 1
    return nt


def make_basic_block(params, *, in_planes, planes, stride, height, width):
    """Prepare (once) banded bf16 weights / folded BN / shortcut matrix and return a jitted
    forward(x_nchw) -> y_nchw matching BasicBlockSmall (eval-mode BN, pad_constant shortcut)."""
    assert stride in (1, 2)
    H, W, C = height, width, planes
    H2, W2 = H // stride, W // stride

    # Fold eval-mode BN scale into the conv weights (bias is added in the kernel epilogue).
    w1 = np.asarray(params["w1"], np.float32) * np.asarray(params["scale1"], np.float32)
    w2 = np.asarray(params["w2"], np.float32) * np.asarray(params["scale2"], np.float32)
    b1_row = jnp.asarray(np.tile(np.asarray(params["bias1"], np.float32), W2)[None, :])
    b2_row = jnp.asarray(np.tile(np.asarray(params["bias2"], np.float32), W2)[None, :])

    if stride == 1:
        assert in_planes == planes, "stride-1 BasicBlockSmall requires in_planes == planes"
        cc, h_in = in_planes, H
        w1_bands = _conv3x3_bands(w1, W2)                      # (3, W*Cin, W*C)
        pad_top, pad_bot = 1, 1
        scm = None
    else:
        assert H % 2 == 0 and W % 2 == 0
        p = planes // 4
        assert in_planes + 2 * p == planes, \
            "pad_constant shortcut requires planes == in_planes + 2*(planes//4)"
        cc, h_in = 4 * in_planes, H2                           # space-to-depth block layout
        w1_bands = _conv3x3_stride2_bands(w1, W2)              # (2, W2*4Cin, W2*C)
        pad_top, pad_bot = 1, 0
        scm = jnp.asarray(_pad_constant_shortcut_matrix(in_planes, planes, W2), jnp.bfloat16)

    w1_bands = jnp.asarray(w1_bands, jnp.bfloat16)
    w2_bands = jnp.asarray(_conv3x3_bands(w2, W2), jnp.bfloat16)   # (3, W2*C, W2*C)
    identity_sc = stride == 1
    wcc, wc = W2 * cc, W2 * C

    kernel = _make_kernel(h_out=H2, w_out=W2, cc=cc, c=C,
                          pad_top=pad_top, pad_bot=pad_bot, identity_sc=identity_sc)

    def forward(x_nchw):
        # NCHW in / NCHW out to match the PyTorch module.
        # TODO(synk): when chaining blocks, keep activations in the lane-dense (N, H, W*C)
        #             layout between blocks to avoid these per-call transposes.
        N = x_nchw.shape[0]
        x_nhwc = jnp.transpose(x_nchw, (0, 2, 3, 1)).astype(jnp.bfloat16)
        if stride == 1:
            x2d = x_nhwc.reshape(N, H, wcc)                    # column = w*Cin + ci
        else:
            # space-to-depth: column = ow*4Cin + (dr*2+dc)*Cin + ci  (pixel (2oh+dr, 2ow+dc))
            x2d = (x_nhwc.reshape(N, H2, 2, W2, 2, in_planes)
                   .transpose(0, 1, 3, 2, 4, 5)
                   .reshape(N, H2, wcc))

        nt = _pick_nt(N, H2)
        in_specs = [
            pl.BlockSpec((nt, h_in, wcc), lambda n: (n, 0, 0)),
            # Constant-index operands (weights / bias rows): fetched once, re-used every step.
            # TODO(synk): at large stage shapes on v7x, mark these pl.Buffered(1) to halve
            #             their VMEM footprint (64 MiB physical VMEM per core).
            pl.BlockSpec(w1_bands.shape, lambda n: (0, 0, 0)),
            pl.BlockSpec(b1_row.shape, lambda n: (0, 0)),
            pl.BlockSpec(w2_bands.shape, lambda n: (0, 0, 0)),
            pl.BlockSpec(b2_row.shape, lambda n: (0, 0)),
        ]
        args = [x2d, w1_bands, b1_row, w2_bands, b2_row]
        if not identity_sc:
            in_specs.append(pl.BlockSpec(scm.shape, lambda n: (0, 0)))
            args.append(scm)

        out2d = pl.pallas_call(
            kernel,
            out_shape=jax.ShapeDtypeStruct((N, H2, wc), jnp.float32),
            grid=(N // nt,),
            in_specs=in_specs,
            out_specs=pl.BlockSpec((nt, H2, wc), lambda n: (n, 0, 0)),
            compiler_params=pltpu.CompilerParams(
                dimension_semantics=("parallel",),
                vmem_limit_bytes=32 * 1024 * 1024),
        )(*args)

        return jnp.transpose(out2d.reshape(N, H2, W2, C), (0, 3, 1, 2))

    return jax.jit(forward)


# ------------------------------- parameters & pure-JAX reference ---------------------------- #

def init_params(key, in_planes, planes):
    """Deterministic synthetic parameters (conv weights in HWIO, eval-mode BN pre-folded)."""
    ks = jax.random.split(key, 10)

    def bn(kg, kb, km, kv):
        gamma = 1.0 + 0.1 * jax.random.normal(kg, (planes,), jnp.float32)
        beta = 0.1 * jax.random.normal(kb, (planes,), jnp.float32)
        mean = 0.1 * jax.random.normal(km, (planes,), jnp.float32)
        var = 1.0 + 0.1 * jnp.abs(jax.random.normal(kv, (planes,), jnp.float32))
        scale = gamma / jnp.sqrt(var + _EPS)
        return scale, beta - mean * scale

    w1 = 0.1 * jax.random.normal(ks[0], (3, 3, in_planes, planes), jnp.float32)
    w2 = 0.1 * jax.random.normal(ks[1], (3, 3, planes, planes), jnp.float32)
    s1, b1 = bn(*ks[2:6])
    s2, b2 = bn(*ks[6:10])
    return dict(w1=w1, scale1=s1, bias1=b1, w2=w2, scale2=s2, bias2=b2)


def reference_forward(x_nchw, params, *, stride):
    """Pure-JAX (XLA) reference with identical semantics, NCHW in / NCHW out."""
    x = jnp.transpose(x_nchw, (0, 2, 3, 1))
    dn = ("NHWC", "HWIO", "NHWC")
    hp = jax.lax.Precision.HIGHEST
    in_planes = x.shape[-1]
    planes = params["w1"].shape[-1]
    out = jax.lax.conv_general_dilated(x, params["w1"], (stride, stride),
                                       ((1, 1), (1, 1)), dimension_numbers=dn, precision=hp)
    out = jnp.maximum(out * params["scale1"] + params["bias1"], 0.0)
    out = jax.lax.conv_general_dilated(out, params["w2"], (1, 1),
                                       ((1, 1), (1, 1)), dimension_numbers=dn, precision=hp)
    out = out * params["scale2"] + params["bias2"]
    if stride != 1 or in_planes != planes:
        p = planes // 4
        sc = jnp.pad(x[:, ::2, ::2, :], ((0, 0), (0, 0), (0, 0), (p, p)))
    else:
        sc = x
    out = jnp.maximum(out + sc, 0.0)
    return jnp.transpose(out, (0, 3, 1, 2))


# ------------------------------------------ main -------------------------------------------- #

if __name__ == "__main__":
    key = jax.random.PRNGKey(0)
    kx1, kx2, kx3, kp1, kp2 = jax.random.split(key, 5)

    # bf16 MXU inputs vs. f32-HIGHEST reference -> loosened tolerance.
    RTOL = ATOL = 3e-2

    # Case 1: identity shortcut (stride=1, in_planes == planes == 8), x NCHW = (2, 8, 16, 16)
    p1 = init_params(kp1, in_planes=8, planes=8)
    blk1 = make_basic_block(p1, in_planes=8, planes=8, stride=1, height=16, width=16)
    x1 = jax.random.normal(kx1, (2, 8, 16, 16), jnp.float32)
    y1 = jax.block_until_ready(blk1(x1))
    assert y1.shape == (2, 8, 16, 16)
    np.testing.assert_allclose(np.asarray(y1), np.asarray(reference_forward(x1, p1, stride=1)),
                               rtol=RTOL, atol=ATOL)

    # Case 2: downsampling block (stride=2, 4 -> 8 planes), pad_constant shortcut,
    # x NCHW = (2, 4, 16, 16)
    p2 = init_params(kp2, in_planes=4, planes=8)
    blk2 = make_basic_block(p2, in_planes=4, planes=8, stride=2, height=16, width=16)
    x2 = jax.random.normal(kx2, (2, 4, 16, 16), jnp.float32)
    y2 = jax.block_until_ready(blk2(x2))
    assert y2.shape == (2, 8, 8, 8)
    np.testing.assert_allclose(np.asarray(y2), np.asarray(reference_forward(x2, p2, stride=2)),
                               rtol=RTOL, atol=ATOL)

    # Case 3: larger batch so NT > 1 images per grid step is exercised on both shortcut paths.
    x3 = jax.random.normal(kx3, (8, 8, 16, 16), jnp.float32)
    y3 = jax.block_until_ready(blk1(x3))
    np.testing.assert_allclose(np.asarray(y3), np.asarray(reference_forward(x3, p1, stride=1)),
                               rtol=RTOL, atol=ATOL)
    x4 = x3[:, :4]                                   # (8, 4, 16, 16)
    y4 = jax.block_until_ready(blk2(x4))
    np.testing.assert_allclose(np.asarray(y4), np.asarray(reference_forward(x4, p2, stride=2)),
                               rtol=RTOL, atol=ATOL)

    print("KERNEL_OK")
</pallas_src>

<mosaic_0001>
module attributes {stable_mosaic.version = 11 : i64} {
  func.func @kernel(%arg0: i32, %arg1: memref<1x16x128xbf16, #tpu.memory_space<vmem>>, %arg2: memref<3x128x128xbf16, #tpu.memory_space<vmem>>, %arg3: memref<1x128xf32, #tpu.memory_space<vmem>>, %arg4: memref<3x128x128xbf16, #tpu.memory_space<vmem>>, %arg5: memref<1x128xf32, #tpu.memory_space<vmem>>, %arg6: memref<1x16x128xf32, #tpu.memory_space<vmem>>) attributes {dimension_semantics = [#tpu.dimension_semantics<parallel>], iteration_bounds = array<i64: 2>, scalar_prefetch = 0 : i64, scratch_operands = 0 : i64, tpu.core_type = #tpu.core_type<tc>, window_params = [{transform_indices = @transform_0, window_bounds = array<i64: 1, 16, 128>}, {pipeline_mode = #tpu.pipeline_mode<synchronous>, transform_indices = @transform_1, window_bounds = array<i64: 3, 128, 128>}, {pipeline_mode = #tpu.pipeline_mode<synchronous>, transform_indices = @transform_2, window_bounds = array<i64: 1, 128>}, {pipeline_mode = #tpu.pipeline_mode<synchronous>, transform_indices = @transform_3, window_bounds = array<i64: 3, 128, 128>}, {pipeline_mode = #tpu.pipeline_mode<synchronous>, transform_indices = @transform_4, window_bounds = array<i64: 1, 128>}, {transform_indices = @transform_5, window_bounds = array<i64: 1, 16, 128>}]} {
    %c0 = arith.constant 0 : index
    %c0_0 = arith.constant 0 : index
    %c0_1 = arith.constant 0 : index
    %0 = vector.load %arg1[%c0, %c0_0, %c0_1] : memref<1x16x128xbf16, #tpu.memory_space<vmem>>, vector<1x16x128xbf16>
    %1 = arith.extf %0 : vector<1x16x128xbf16> to vector<1x16x128xf32>
    %cst = arith.constant 0.000000e+00 : f32
    %2 = vector.broadcast %cst : f32 to vector<1x1x128xf32>
    %3 = tpu.concatenate %2, %1, %2 in 1 : vector<1x1x128xf32>, vector<1x16x128xf32>, vector<1x1x128xf32> -> vector<1x18x128xf32>
    %cst_2 = arith.constant 0.000000e+00 : f32
    %4 = vector.broadcast %cst_2 : f32 to vector<16x128xf32>
    %5 = vector.extract_strided_slice %3 {offsets = [0, 0, 0], sizes = [1, 16, 128], strides = [1, 1, 1]} : vector<1x18x128xf32> to vector<1x16x128xf32>
    %6 = vector.shape_cast %5 : vector<1x16x128xf32> to vector<16x128xf32>
    %7 = arith.truncf %6 : vector<16x128xf32> to vector<16x128xbf16>
    %c0_3 = arith.constant 0 : index
    %c0_4 = arith.constant 0 : index
    %c0_5 = arith.constant 0 : index
    %8 = vector.load %arg2[%c0_3, %c0_4, %c0_5] : memref<3x128x128xbf16, #tpu.memory_space<vmem>>, vector<1x128x128xbf16>
    %9 = vector.shape_cast %8 : vector<1x128x128xbf16> to vector<128x128xbf16>
    %cst_6 = arith.constant dense<0.000000e+00> : vector<16x128xf32>
    %10 = tpu.matmul %7, %9, %cst_6 {dimension_numbers = #tpu.dot_dimension_numbers<[1], [0], [0], [1], [0, 0, 1, 1], [], []>} : vector<16x128xbf16>, vector<128x128xbf16>, vector<16x128xf32> -> vector<16x128xf32>
    %11 = arith.addf %4, %10 : vector<16x128xf32>
    %12 = vector.extract_strided_slice %3 {offsets = [0, 1, 0], sizes = [1, 16, 128], strides = [1, 1, 1]} : vector<1x18x128xf32> to vector<1x16x128xf32>
    %13 = vector.shape_cast %12 : vector<1x16x128xf32> to vector<16x128xf32>
    %14 = arith.truncf %13 : vector<16x128xf32> to vector<16x128xbf16>
    %c1 = arith.constant 1 : index
    %c0_7 = arith.constant 0 : index
    %c0_8 = arith.constant 0 : index
    %15 = vector.load %arg2[%c1, %c0_7, %c0_8] : memref<3x128x128xbf16, #tpu.memory_space<vmem>>, vector<1x128x128xbf16>
    %16 = vector.shape_cast %15 : vector<1x128x128xbf16> to vector<128x128xbf16>
    %cst_9 = arith.constant dense<0.000000e+00> : vector<16x128xf32>
    %17 = tpu.matmul %14, %16, %cst_9 {dimension_numbers = #tpu.dot_dimension_numbers<[1], [0], [0], [1], [0, 0, 1, 1], [], []>} : vector<16x128xbf16>, vector<128x128xbf16>, vector<16x128xf32> -> vector<16x128xf32>
    %18 = arith.addf %11, %17 : vector<16x128xf32>
    %19 = vector.extract_strided_slice %3 {offsets = [0, 2, 0], sizes = [1, 16, 128], strides = [1, 1, 1]} : vector<1x18x128xf32> to vector<1x16x128xf32>
    %20 = vector.shape_cast %19 : vector<1x16x128xf32> to vector<16x128xf32>
    %21 = arith.truncf %20 : vector<16x128xf32> to vector<16x128xbf16>
    %c2 = arith.constant 2 : index
    %c0_10 = arith.constant 0 : index
    %c0_11 = arith.constant 0 : index
    %22 = vector.load %arg2[%c2, %c0_10, %c0_11] : memref<3x128x128xbf16, #tpu.memory_space<vmem>>, vector<1x128x128xbf16>
    %23 = vector.shape_cast %22 : vector<1x128x128xbf16> to vector<128x128xbf16>
    %cst_12 = arith.constant dense<0.000000e+00> : vector<16x128xf32>
    %24 = tpu.matmul %21, %23, %cst_12 {dimension_numbers = #tpu.dot_dimension_numbers<[1], [0], [0], [1], [0, 0, 1, 1], [], []>} : vector<16x128xbf16>, vector<128x128xbf16>, vector<16x128xf32> -> vector<16x128xf32>
    %25 = arith.addf %18, %24 : vector<16x128xf32>
    %c0_13 = arith.constant 0 : index
    %c0_14 = arith.constant 0 : index
    %26 = vector.load %arg3[%c0_13, %c0_14] : memref<1x128xf32, #tpu.memory_space<vmem>>, vector<1x128xf32>
    %27 = vector.broadcast %26 : vector<1x128xf32> to vector<16x128xf32>
    %28 = arith.addf %25, %27 : vector<16x128xf32>
    %cst_15 = arith.constant 0.000000e+00 : f32
    %29 = vector.broadcast %cst_15 : f32 to vector<16x128xf32>
    %30 = arith.maximumf %28, %29 : vector<16x128xf32>
    %cst_16 = arith.constant 0.000000e+00 : f32
    %31 = vector.broadcast %cst_16 : f32 to vector<1x1x128xf32>
    %32 = vector.shape_cast %30 : vector<16x128xf32> to vector<1x16x128xf32>
    %33 = tpu.concatenate %31, %32, %31 in 1 : vector<1x1x128xf32>, vector<1x16x128xf32>, vector<1x1x128xf32> -> vector<1x18x128xf32>
    %34 = vector.shape_cast %1 : vector<1x16x128xf32> to vector<16x128xf32>
    %35 = vector.extract_strided_slice %33 {offsets = [0, 0, 0], sizes = [1, 16, 128], strides = [1, 1, 1]} : vector<1x18x128xf32> to vector<1x16x128xf32>
    %36 = vector.shape_cast %35 : vector<1x16x128xf32> to vector<16x128xf32>
    %37 = arith.truncf %36 : vector<16x128xf32> to vector<16x128xbf16>
    %c0_17 = arith.constant 0 : index
    %c0_18 = arith.constant 0 : index
    %c0_19 = arith.constant 0 : index
    %38 = vector.load %arg4[%c0_17, %c0_18, %c0_19] : memref<3x128x128xbf16, #tpu.memory_space<vmem>>, vector<1x128x128xbf16>
    %39 = vector.shape_cast %38 : vector<1x128x128xbf16> to vector<128x128xbf16>
    %cst_20 = arith.constant dense<0.000000e+00> : vector<16x128xf32>
    %40 = tpu.matmul %37, %39, %cst_20 {dimension_numbers = #tpu.dot_dimension_numbers<[1], [0], [0], [1], [0, 0, 1, 1], [], []>} : vector<16x128xbf16>, vector<128x128xbf16>, vector<16x128xf32> -> vector<16x128xf32>
    %41 = arith.addf %34, %40 : vector<16x128xf32>
    %42 = vector.extract_strided_slice %33 {offsets = [0, 1, 0], sizes = [1, 16, 128], strides = [1, 1, 1]} : vector<1x18x128xf32> to vector<1x16x128xf32>
    %43 = vector.shape_cast %42 : vector<1x16x128xf32> to vector<16x128xf32>
    %44 = arith.truncf %43 : vector<16x128xf32> to vector<16x128xbf16>
    %c1_21 = arith.constant 1 : index
    %c0_22 = arith.constant 0 : index
    %c0_23 = arith.constant 0 : index
    %45 = vector.load %arg4[%c1_21, %c0_22, %c0_23] : memref<3x128x128xbf16, #tpu.memory_space<vmem>>, vector<1x128x128xbf16>
    %46 = vector.shape_cast %45 : vector<1x128x128xbf16> to vector<128x128xbf16>
    %cst_24 = arith.constant dense<0.000000e+00> : vector<16x128xf32>
    %47 = tpu.matmul %44, %46, %cst_24 {dimension_numbers = #tpu.dot_dimension_numbers<[1], [0], [0], [1], [0, 0, 1, 1], [], []>} : vector<16x128xbf16>, vector<128x128xbf16>, vector<16x128xf32> -> vector<16x128xf32>
    %48 = arith.addf %41, %47 : vector<16x128xf32>
    %49 = vector.extract_strided_slice %33 {offsets = [0, 2, 0], sizes = [1, 16, 128], strides = [1, 1, 1]} : vector<1x18x128xf32> to vector<1x16x128xf32>
    %50 = vector.shape_cast %49 : vector<1x16x128xf32> to vector<16x128xf32>
    %51 = arith.truncf %50 : vector<16x128xf32> to vector<16x128xbf16>
    %c2_25 = arith.constant 2 : index
    %c0_26 = arith.constant 0 : index
    %c0_27 = arith.constant 0 : index
    %52 = vector.load %arg4[%c2_25, %c0_26, %c0_27] : memref<3x128x128xbf16, #tpu.memory_space<vmem>>, vector<1x128x128xbf16>
    %53 = vector.shape_cast %52 : vector<1x128x128xbf16> to vector<128x128xbf16>
    %cst_28 = arith.constant dense<0.000000e+00> : vector<16x128xf32>
    %54 = tpu.matmul %51, %53, %cst_28 {dimension_numbers = #tpu.dot_dimension_numbers<[1], [0], [0], [1], [0, 0, 1, 1], [], []>} : vector<16x128xbf16>, vector<128x128xbf16>, vector<16x128xf32> -> vector<16x128xf32>
    %55 = arith.addf %48, %54 : vector<16x128xf32>
    %c0_29 = arith.constant 0 : index
    %c0_30 = arith.constant 0 : index
    %56 = vector.load %arg5[%c0_29, %c0_30] : memref<1x128xf32, #tpu.memory_space<vmem>>, vector<1x128xf32>
    %57 = vector.broadcast %56 : vector<1x128xf32> to vector<16x128xf32>
    %58 = arith.addf %55, %57 : vector<16x128xf32>
    %cst_31 = arith.constant 0.000000e+00 : f32
    %59 = vector.broadcast %cst_31 : f32 to vector<16x128xf32>
    %60 = arith.maximumf %58, %59 : vector<16x128xf32>
    %61 = vector.shape_cast %60 : vector<16x128xf32> to vector<1x16x128xf32>
    %c0_32 = arith.constant 0 : index
    %c0_33 = arith.constant 0 : index
    %c0_34 = arith.constant 0 : index
    %62 = vector.load %arg6[%c0_32, %c0_33, %c0_34] : memref<1x16x128xf32, #tpu.memory_space<vmem>>, vector<1x16x128xf32>
    tpu.vector_store %arg6[%c0_32, %c0_33, %c0_34], %61 {strides = array<i32>} : memref<1x16x128xf32, #tpu.memory_space<vmem>>, vector<1x16x128xf32>,
    return
  }
  func.func @transform_0(%arg0: i32) -> (i32, i32, i32) {
    %c0_i32 = arith.constant 0 : i32
    %c0_i32_0 = arith.constant 0 : i32
    %c0_i32_1 = arith.constant 0 : i32
    return %arg0, %c0_i32, %c0_i32_0 : i32, i32, i32
  }
  func.func @transform_1(%arg0: i32) -> (i32, i32, i32) {
    %c0_i32 = arith.constant 0 : i32
    %c0_i32_0 = arith.constant 0 : i32
    %c0_i32_1 = arith.constant 0 : i32
    %c0_i32_2 = arith.constant 0 : i32
    return %c0_i32, %c0_i32_0, %c0_i32_1 : i32, i32, i32
  }
  func.func @transform_2(%arg0: i32) -> (i32, i32) {
    %c0_i32 = arith.constant 0 : i32
    %c0_i32_0 = arith.constant 0 : i32
    %c0_i32_1 = arith.constant 0 : i32
    return %c0_i32, %c0_i32_0 : i32, i32
  }
  func.func @transform_3(%arg0: i32) -> (i32, i32, i32) {
    %c0_i32 = arith.constant 0 : i32
    %c0_i32_0 = arith.constant 0 : i32
    %c0_i32_1 = arith.constant 0 : i32
    %c0_i32_2 = arith.constant 0 : i32
    return %c0_i32, %c0_i32_0, %c0_i32_1 : i32, i32, i32
  }
  func.func @transform_4(%arg0: i32) -> (i32, i32) {
    %c0_i32 = arith.constant 0 : i32
    %c0_i32_0 = arith.constant 0 : i32
    %c0_i32_1 = arith.constant 0 : i32
    return %c0_i32, %c0_i32_0 : i32, i32
  }
  func.func @transform_5(%arg0: i32) -> (i32, i32, i32) {
    %c0_i32 = arith.constant 0 : i32
    %c0_i32_0 = arith.constant 0 : i32
    %c0_i32_1 = arith.constant 0 : i32
    return %arg0, %c0_i32, %c0_i32_0 : i32, i32, i32
  }
}

</mosaic_0001>

<bundles_post_ra>
// kernel: forward.1
= control target key start
LH: loop header
LB: loop body
LE: loop exit
PB: predicated region body
PF: predicated region fallthrough
CT: control target
= control target key end

     0   :  { %s1429_s18 = smov 0   ;;  %s1691_s0 = inlined_call_operand.vmem [shape: bf16[2,16,128], index: 0, kind: input, shape index: {}]   ;;  %s1692_s1 = inlined_call_operand.vmem [shape: bf16[3,128,128], index: 1, kind: input, shape index: {}]   ;;  %s1693_s2 = inlined_call_operand.vmem [shape: f32[1,128], index: 2, kind: input, shape index: {}]   ;;  %s1694_s3 = inlined_call_operand.vmem [shape: bf16[3,128,128], index: 3, kind: input, shape index: {}]   ;;  %s1695_s4 = inlined_call_operand.vmem [shape: f32[1,128], index: 4, kind: input, shape index: {}]   ;;  %s1696_s5 = inlined_call_operand.vmem [shape: f32[2,16,128], index: 5, kind: output, shape index: {}]  }
   0x1 LB: > { %s1016_s19 = sadd.s32 4294967295, %s1394_s18   ;;  %p1020_p0 = scmp.ge.s32.totalorder %s1394_s18, 1  ;;  %s1394_s18 = sphi %s1429_s18, %s15_s18  }
   0x2   : > { %p187_p1 = scmp.lt.s32.totalorder %s1394_s18, 3 }
   0x4   : > { %p188_p2 = pnand %p1020_p0, %p187_p1 }
   0x5   : > { %v1340_v0 = vld [vmem:[%s1692_s1 + $0x40] sm:$0xff] (!%p188_p2)   ;;  %v1396_v1 = vmov (!%p188_p2), 0.0   ;;  %v1342_v3 = vld [vmem:[%s1692_s1 + $0x48] sm:$0xff] (!%p188_p2)   ;;  %vm1397_vm0 = vmmov (!%p188_p2), 0   ;;  %p215_p3 = scmp.lt.s32.totalorder (!%p188_p2), %s1016_s19, 1  ;;  %v1344_v5 = vld [vmem:[%s1692_s1 + $0x50] sm:$0xff] (!%p188_p2)  }
   0x6   : > { %191 = sbr.rel (%p188_p2) target bundleno = 548 (0x224), region = 40  ;;  %1209 = vmatprep.subr.bf16.mxu0 (!%p188_p2), %v1396_v1  ;;  %1229 = vmatprep.subr.bf16.mxu1 (!%p188_p2), %v1396_v1  ;;  %v1341_v2 = vld [vmem:[%s1692_s1] sm:$0xff] (!%p188_p2)   ;;  %v1343_v4 = vld [vmem:[%s1692_s1 + $0x8] sm:$0xff] (!%p188_p2)   ;;  %v1345_v6 = vld [vmem:[%s1692_s1 + $0x10] sm:$0xff] (!%p188_p2)   ;;  %vm232_vm1 = vcmask (!%p188_p2), 1040384   ;;  %vm1398_vm4 = vmmov (!%p188_p2), 1  }
   0x7   : > { %1210 = vmatpush3.bf16.msra.mxu0 (!%p188_p2), %v1340_v0  ;;  %1225 = vmatprep.mubr.msk.bf16.mxu0 (!%p188_p2), %vm1397_vm0, %v1396_v1  ;;  %v1346_v7 = vld [vmem:[%s1692_s1 + $0x58] sm:$0xff] (!%p188_p2)   ;;  %v1348_v9 = vld [vmem:[%s1692_s1 + $0x60] sm:$0xff] (!%p188_p2)   ;;  %v1350_v12 = vld [vmem:[%s1692_s1 + $0x68] sm:$0xff] (!%p188_p2)   ;;  %vm276_vm3 = vsmask.f32 (!%p188_p2), 7424  ;;  %vm487_vm6 = vcmask (!%p188_p2), 1046528  }
   0x8   : > { %1230 = vmatpush3.bf16.msra.mxu1 (!%p188_p2), %v1341_v2  ;;  %1211 = vmatprep.subr.bf16.mxu0 (!%p188_p2), %v1396_v1  ;;  %v1347_v8 = vld [vmem:[%s1692_s1 + $0x18] sm:$0xff] (!%p188_p2)   ;;  %v1349_v10 = vld [vmem:[%s1692_s1 + $0x20] sm:$0xff] (!%p188_p2)   ;;  %v1351_v15 = vld [vmem:[%s1692_s1 + $0x28] sm:$0xff] (!%p188_p2)  }
   0x9   : > { %1231 = vmatprep.subr.bf16.mxu1 (!%p188_p2), %v1396_v1  ;;  %1245 = vmatprep.mubr.msk.bf16.mxu1 (!%p188_p2), %vm1397_vm0, %v1396_v1  ;;  %v1352_v18 = vld [vmem:[%s1692_s1 + $0x70] sm:$0xff] (!%p188_p2)   ;;  %vm1057_vm2 = vmneg (!%p188_p2), %vm232_vm1  ;;  %v1354_v28 = vld [vmem:[%s1692_s1 + $0x78] sm:$0xff] (!%p188_p2)  }
   0xa   : > { %v1353_v19 = vld [vmem:[%s1692_s1 + $0x30] sm:$0xff] (!%p188_p2)   ;;  %v1355_v29 = vld [vmem:[%s1692_s1 + $0x38] sm:$0xff] (!%p188_p2)   ;;  %vm1521_vm5 = vmpackc.low (!%p188_p2), %vm1398_vm4, %vm1057_vm2 }
   0xb   : > { %1212 = vmatpush3.bf16.msra.mxu0 (!%p188_p2), %v1342_v3  ;;  %v1356_v34 = vld [vmem:[%s1692_s1 + $0x80] sm:$0xff] (!%p188_p2)   ;;  %v1357_v37 = vld [vmem:[%s1692_s1 + $0x88] sm:$0xff] (!%p188_p2)   ;;  %v1358_v38 = vld [vmem:[%s1692_s1 + $0x90] sm:$0xff] (!%p188_p2)  }
   0xc   : > { %1232 = vmatpush3.bf16.msra.mxu1 (!%p188_p2), %v1343_v4  ;;  %1213 = vmatprep.subr.bf16.mxu0 (!%p188_p2), %v1396_v1  ;;  %v1359_v39 = vld [vmem:[%s1692_s1 + $0x98] sm:$0xff] (!%p188_p2)   ;;  %v1360_v40 = vld [vmem:[%s1692_s1 + $0xa0] sm:$0xff] (!%p188_p2)   ;;  %v1361_v41 = vld [vmem:[%s1692_s1 + $0xa8] sm:$0xff] (!%p188_p2)  }
   0xd   : > { %s1700_s19 = smov (!%p215_p3, %s1016_s19), 1  ;;  %1233 = vmatprep.subr.bf16.mxu1 %v1396_v1  ;;  %v1362_v42 = vld [vmem:[%s1692_s1 + $0xb0] sm:$0xff]   ;;  %v1363_v43 = vld [vmem:[%s1692_s1 + $0xb8] sm:$0xff]   ;;  %v1364_v47 = vld [vmem:[%s1694_s3] sm:$0xff]  }
   0xe   : > { %s1149_s9 = sshll.u32 %s1700_s19, 3  ;;  %v1367_v48 = vld [vmem:[%s1694_s3 + $0x40] sm:$0xff]   ;;  %v1365_v49 = vld [vmem:[%s1694_s3 + $0x8] sm:$0xff]   ;;  %v1366_v51 = vld [vmem:[%s1694_s3 + $0x10] sm:$0xff]   ;;  %s1150_s7 = sshll.u32 %s1700_s19, 4 }
   0xf   : > { %1214 = vmatpush3.bf16.msra.mxu0 %v1344_v5  ;;  %s219_s14 = scalar_lea.vmem %s1691_s0, %s1149_s9  ;;  %v1369_v50 = vld [vmem:[%s1694_s3 + $0x48] sm:$0xff]   ;;  %v1371_v52 = vld [vmem:[%s1694_s3 + $0x50] sm:$0xff]   ;;  %v1368_v53 = vld [vmem:[%s1694_s3 + $0x18] sm:$0xff]   ;;  %s224_s10 = scalar_lea.vmem %s1696_s5, %s1150_s7 }
  0x10   : > { %1234 = vmatpush3.bf16.msra.mxu1 %v1345_v6  ;;  %1215 = vmatprep.subr.bf16.mxu0 %v1396_v1  ;;  %v1487_v11 = vld [vmem:[%s219_s14] sm:$0xff]   ;;  %v1372_v55 = vld [vmem:[%s1694_s3 + $0x28] sm:$0xff]   ;;  %v1373_v56 = vld [vmem:[%s1694_s3 + $0x58] sm:$0xff]  }
  0x11   : > { %1235 = vmatprep.subr.bf16.mxu1 %v1396_v1  ;;  %v1153_v13 = vunpack.c.l.bf16 %v1487_v11  ;;  %v1154_v14 = vunpack.c.h.bf16 %v1487_v11  ;;  %v1370_v54 = vld [vmem:[%s1694_s3 + $0x20] sm:$0xff]   ;;  %v1374_v57 = vld [vmem:[%s1694_s3 + $0x30] sm:$0xff]   ;;  %v1376_v59 = vld [vmem:[%s1694_s3 + $0x38] sm:$0xff]  }
  0x12   : > { %v1375_v58 = vld [vmem:[%s1694_s3 + $0x60] sm:$0xff]   ;;  %v1377_v60 = vld [vmem:[%s1694_s3 + $0x68] sm:$0xff]   ;;  %v1378_v61 = vld [vmem:[%s1694_s3 + $0x70] sm:$0xff]  }
  0x13   : > { %1216 = vmatpush3.bf16.msra.mxu0 %v1346_v7  ;;  %v233_v16 = vrot.slane %v1153_v13, 7  ;;  %v234_v17 = vrot.slane %v1154_v14, 7  ;;  %v1380_v62 = vld [vmem:[%s1694_s3 + $0x78] sm:$0xff]   ;;  %v1382_v32 = vld [vmem:[%s1694_s3 + $0x90] sm:$0xff]  }
  0x14   : > { %1236 = vmatpush3.bf16.msra.mxu1 %v1347_v8  ;;  %1217 = vmatprep.subr.bf16.mxu0 %v1396_v1 }
  0x15   : > { %1237 = vmatprep.subr.bf16.mxu1 %v1396_v1  ;;  %v235_v20 = vsel %vm232_vm1, %v233_v16, %v234_v17  ;;  %v239_v21 = vsel %vm232_vm1, 0.0, %v233_v16  ;;  %v240_v22 = vsel %vm232_vm1, %v234_v17, 0.0 }
  0x16   : > { %v241_v23 = vpack.c.bf16 %v235_v20, %v239_v21  ;;  %v258_v24 = vpack.c.bf16 %v240_v22, %v240_v22  ;;  %v1059_v36 = vpack.c.bf16 %v235_v20, %v233_v16 }
  0x17   : > { %1218 = vmatpush3.bf16.msra.mxu0 %v1348_v9 }
  0x18   : > { %1238 = vmatpush3.bf16.msra.mxu1 %v1349_v10  ;;  %1219 = vmatprep.subr.bf16.mxu0 %v1396_v1  ;;  %v278_v25 = vshrl.u32 %v241_v23, 16  ;;  %v280_v26 = vshll.u32 %v241_v23, 16  ;;  %v285_v27 = vshll.u32 %v258_v24, 16  ;;  %v488_v44 = vrot.slane %v241_v23, 1 }
  0x19   : > { %1239 = vmatprep.subr.bf16.mxu1 %v1396_v1  ;;  %v489_v45 = vrot.slane %v258_v24, 1 }
  0x1a   : > { %v282_v30 = vrot.slane %v280_v26, 1  ;;  %v287_v31 = vrot.slane %v285_v27, 1 }
  0x1b   : > { %1220 = vmatpush3.bf16.msra.mxu0 %v1350_v12  ;;  %v490_v46 = vsel %vm487_vm6, %v488_v44, %v489_v45  ;;  %v1085_v12 = vld [vmem:[%s1693_s2] ss:$0 sm:$0xff]  ;;  %v1383_v45 = vld [vmem:[%s1694_s3 + $0x98] sm:$0xff]  }
  0x1c   : > { %1240 = vmatpush3.bf16.msra.mxu1 %v1351_v15  ;;  %1221 = vmatprep.subr.bf16.mxu0 %v1396_v1  ;;  %v283_v33 = vor.u32 %v282_v30, %v278_v25 }
  0x1d   : > { %1241 = vmatprep.subr.bf16.mxu1 %v1396_v1 }
  0x1e   : > { %v288_v35 = vsel %vm276_vm3, %v283_v33, %v287_v31 }
  0x1f   : > { %1222 = vmatpush3.bf16.msra.mxu0 %v1352_v18 }
  0x20   : > { %1242 = vmatpush3.bf16.msra.mxu1 %v1353_v19  ;;  %1223 = vmatprep.subr.bf16.mxu0 %v1396_v1 }
  0x21   : > { %1243 = vmatprep.subr.bf16.mxu1 %v1396_v1 }
  0x23   : > { %1224 = vmatpush3.bf16.msra.mxu0 %v1354_v28 }
  0x24   : > { %1244 = vmatpush3.bf16.msra.mxu1 %v1355_v29  ;;  %1249 = vmatprep.subr.bf16.mxu0 %v1396_v1  ;;  %v1379_v29 = vld [vmem:[%s1694_s3 + $0x80] sm:$0xff]  }
  0x25   : > { %1269 = vmatprep.subr.bf16.mxu1 %v1396_v1 }
  0x26   : > { %1226 = vmatmul.mubr.bf16.vlgmr.msra.gmra.mrb[0].mxu0 %v288_v35 }
  0x27   : > { %1246 = vmatmul.mubr.msk.bf16.vlgmr.msra.gmra.mrb[0].mxu1 %vm1521_vm5, %v1059_v36  ;;  %1250 = vmatpush3.bf16.msra.mxu0 %v1356_v34 }
  0x28   : > { %1251 = vmatprep.subr.bf16.mxu0 %v1396_v1  ;;  %1265 = vmatprep.mubr.msk.bf16.mxu0 %vm1397_vm0, %v1396_v1 }
  0x29   : > { %1285 = vmatprep.mubr.msk.bf16.mxu1 %vm1397_vm0, %v1396_v1  ;;  %1270 = vmatpush3.bf16.msra.mxu1 %v1364_v47  ;;  %v1385_v47 = vld [vmem:[%s1694_s3 + $0xa8] sm:$0xff]  }
  0x2a   : > { %1271 = vmatprep.subr.bf16.mxu1 %v1396_v1 }
  0x2b   : > { %1252 = vmatpush3.bf16.msra.mxu0 %v1357_v37  ;;  %v1381_v37 = vld [vmem:[%s1694_s3 + $0x88] sm:$0xff]  }
  0x2c   : > { %1253 = vmatprep.subr.bf16.mxu0 %v1396_v1 }
  0x2d   : > { %1272 = vmatpush3.bf16.msra.mxu1 %v1365_v49  ;;  %v1387_v49 = vld [vmem:[%s1694_s3 + $0xb8] sm:$0xff]  }
  0x2e   : > { %1273 = vmatprep.subr.bf16.mxu1 %v1396_v1 }
  0x2f   : > { %1254 = vmatpush3.bf16.msra.mxu0 %v1358_v38 }
  0x30   : > { %1255 = vmatprep.subr.bf16.mxu0 %v1396_v1 }
  0x31   : > { %1274 = vmatpush3.bf16.msra.mxu1 %v1366_v51 }
  0x32   : > { %1275 = vmatprep.subr.bf16.mxu1 %v1396_v1 }
  0x33   : > { %1256 = vmatpush3.bf16.msra.mxu0 %v1359_v39 }
  0x34   : > { %1257 = vmatprep.subr.bf16.mxu0 %v1396_v1 }
  0x35   : > { %1276 = vmatpush3.bf16.msra.mxu1 %v1368_v53 }
  0x36   : > { %1277 = vmatprep.subr.bf16.mxu1 %v1396_v1 }
  0x37   : > { %1258 = vmatpush3.bf16.msra.mxu0 %v1360_v40 }
  0x38   : > { %1259 = vmatprep.subr.bf16.mxu0 %v1396_v1 }
  0x39   : > { %1278 = vmatpush3.bf16.msra.mxu1 %v1370_v54 }
  0x3a   : > { %1279 = vmatprep.subr.bf16.mxu1 %v1396_v1 }
  0x3b   : > { %1260 = vmatpush3.bf16.msra.mxu0 %v1361_v41 }
  0x3c   : > { %1261 = vmatprep.subr.bf16.mxu0 %v1396_v1 }
  0x3d   : > { %1280 = vmatpush3.bf16.msra.mxu1 %v1372_v55 }
  0x3e   : > { %1281 = vmatprep.subr.bf16.mxu1 %v1396_v1 }
  0x3f   : > { %1262 = vmatpush3.bf16.msra.mxu0 %v1362_v42 }
  0x40   : > { %1263 = vmatprep.subr.bf16.mxu0 %v1396_v1 }
  0x41   : > { %1282 = vmatpush3.bf16.msra.mxu1 %v1374_v57 }
  0x42   : > { %1283 = vmatprep.subr.bf16.mxu1 %v1396_v1 }
  0x43   : > { %1264 = vmatpush3.bf16.msra.mxu0 %v1363_v43 }
  0x44   : > { %1289 = vmatprep.subr.bf16.mxu0 %v1396_v1 }
  0x45   : > { %1284 = vmatpush3.bf16.msra.mxu1 %v1376_v59 }
  0x46   : > { %1266 = vmatmul.mubr.bf16.vlgmr.msra.gmra.mrb[4].mxu0 %v490_v46  ;;  %1309 = vmatprep.subr.bf16.mxu1 %v1396_v1  ;;  %v1384_v46 = vld [vmem:[%s1694_s3 + $0xa0] sm:$0xff]  }
  0x47   : > { %1305 = vmatprep.mubr.msk.bf16.mxu0 %vm1397_vm0, %v1396_v1  ;;  %1290 = vmatpush3.bf16.msra.mxu0 %v1367_v48  ;;  %v1386_v48 = vld [vmem:[%s1694_s3 + $0xb0] sm:$0xff]  }
  0x48   : > { %1291 = vmatprep.subr.bf16.mxu0 %v1396_v1 }
  0x4b   : > { %1292 = vmatpush3.bf16.msra.mxu0 %v1369_v50 }
  0x4c   : > { %1293 = vmatprep.subr.bf16.mxu0 %v1396_v1 }
  0x4f   : > { %1294 = vmatpush3.bf16.msra.mxu0 %v1371_v52 }
  0x50   : > { %1295 = vmatprep.subr.bf16.mxu0 %v1396_v1 }
  0x53   : > { %1296 = vmatpush3.bf16.msra.mxu0 %v1373_v56 }
  0x54   : > { %1297 = vmatprep.subr.bf16.mxu0 %v1396_v1 }
  0x57   : > { %1298 = vmatpush3.bf16.msra.mxu0 %v1375_v58 }
  0x58   : > { %1299 = vmatprep.subr.bf16.mxu0 %v1396_v1 }
  0x5b   : > { %1300 = vmatpush3.bf16.msra.mxu0 %v1377_v60 }
  0x5c   : > { %1301 = vmatprep.subr.bf16.mxu0 %v1396_v1 }
  0x5f   : > { %1302 = vmatpush3.bf16.msra.mxu0 %v1378_v61 }
  0x60   : > { %1303 = vmatprep.subr.bf16.mxu0 %v1396_v1 }
  0x63   : > { %1304 = vmatpush3.bf16.msra.mxu0 %v1380_v62  ;;  %v1146_v62 = vld [vmem:[%s1695_s4] ss:$0 sm:$0xff] }
  0xf9   : > { %v372_v63 = vpop.f32.mrb[0].mxu0 }
  0xfa   : > { %v461_v0 = vpop.f32.mrb[0].mxu1  ;;  %v1227_v2 = vpop.f32.mrb[1].mxu0 }
  0xfb   : > { %v462_v3 = vadd.f32 %v461_v0, %v372_v63  ;;  %v1247_v4 = vpop.f32.mrb[1].mxu1  ;;  %v375_v5 = vpop.f32.mrb[2].mxu0 }
  0xfc   : > { %v464_v6 = vpop.f32.mrb[2].mxu1  ;;  %v1228_v7 = vpop.f32.mrb[3].mxu0 }
  0xfd   : > { %v465_v8 = vadd.f32 %v464_v6, %v375_v5  ;;  %v1248_v9 = vpop.f32.mrb[3].mxu1 }
 0x119   : > { %v574_v10 = vpop.f32.mrb[4].mxu0 }
 0x11a   : > { %v581_v15 = vadd.f32 %v574_v10, %v462_v3  ;;  %v1267_v16 = vpop.f32.mrb[5].mxu0 }
 0x11b   : > { %v577_v17 = vpop.f32.mrb[6].mxu0 }
 0x11c   : > { %v590_v18 = vadd.f32 %v1085_v12, %v581_v15  ;;  %v582_v19 = vadd.f32 %v577_v17, %v465_v8  ;;  %v1268_v20 = vpop.f32.mrb[7].mxu0 }
 0x11e   : > { %v592_v21 = vmax.f32 %v590_v18, 0.0  ;;  %v591_v22 = vadd.f32 %v1085_v12, %v582_v19 }
 0x120   : > { %v596_v23 = vrot.slane %v592_v21, 7  ;;  %v593_v24 = vmax.f32 %v591_v22, 0.0 }
 0x122   : > { %v597_v25 = vrot.slane %v593_v24, 7  ;;  %v602_v26 = vsel %vm232_vm1, 0.0, %v596_v23 }
 0x124   : > { %v598_v27 = vsel %vm232_vm1, %v596_v23, %v597_v25  ;;  %v603_v28 = vsel %vm232_vm1, %v597_v25, 0.0 }
 0x125   : > { %v604_v30 = vpack.c.bf16 %v598_v27, %v602_v26  ;;  %v1096_v31 = vpack.c.bf16 %v598_v27, %v596_v23  ;;  %v712_v33 = vpack.c.bf16 %v603_v28, %v603_v28 }
 0x127   : > { %v738_v34 = vshll.u32 %v712_v33, 16  ;;  %v854_v35 = vrot.slane %v712_v33, 1  ;;  %1286 = vmatmul.mubr.msk.bf16.vlgmr.msra.gmra.mrb[4].mxu1 %vm1521_vm5, %v1096_v31  ;;  %v733_v36 = vshll.u32 %v604_v30, 16  ;;  %v853_v38 = vrot.slane %v604_v30, 1 }
 0x128   : > { %1310 = vmatpush3.bf16.msra.mxu1 %v1379_v29  ;;  %1325 = vmatprep.mubr.msk.bf16.mxu1 %vm1397_vm0, %v1396_v1  ;;  %v731_v39 = vshrl.u32 %v604_v30, 16 }
 0x129   : > { %1311 = vmatprep.subr.bf16.mxu1 %v1396_v1  ;;  %v735_v40 = vrot.slane %v733_v36, 1  ;;  %v855_v41 = vsel %vm487_vm6, %v853_v38, %v854_v35  ;;  %v740_v43 = vrot.slane %v738_v34, 1 }
 0x12b   : > { %v736_v42 = vor.u32 %v735_v40, %v731_v39 }
 0x12c   : > { %1312 = vmatpush3.bf16.msra.mxu1 %v1381_v37 }
 0x12d   : > { %v741_v44 = vsel %vm276_vm3, %v736_v42, %v740_v43  ;;  %1313 = vmatprep.subr.bf16.mxu1 %v1396_v1 }
 0x12e   : > { %1306 = vmatmul.mubr.bf16.vlgmr.msra.gmra.mrb[8].mxu0 %v741_v44 }
 0x130   : > { %1314 = vmatpush3.bf16.msra.mxu1 %v1382_v32 }
 0x131   : > { %1315 = vmatprep.subr.bf16.mxu1 %v1396_v1 }
 0x134   : > { %1316 = vmatpush3.bf16.msra.mxu1 %v1383_v45 }
 0x135   : > { %1317 = vmatprep.subr.bf16.mxu1 %v1396_v1 }
 0x138   : > { %1318 = vmatpush3.bf16.msra.mxu1 %v1384_v46 }
 0x139   : > { %1319 = vmatprep.subr.bf16.mxu1 %v1396_v1 }
 0x13c   : > { %1320 = vmatpush3.bf16.msra.mxu1 %v1385_v47 }
 0x13d   : > { %1321 = vmatprep.subr.bf16.mxu1 %v1396_v1 }
 0x140   : > { %1322 = vmatpush3.bf16.msra.mxu1 %v1386_v48 }
 0x141   : > { %1323 = vmatprep.subr.bf16.mxu1 %v1396_v1 }
 0x144   : > { %1324 = vmatpush3.bf16.msra.mxu1 %v1387_v49 }
 0x147   : > { %1326 = vmatmul.mubr.bf16.vlgmr.msra.gmra.mrb[8].mxu1 %v855_v41 }
 0x1fa   : > { %v703_v50 = vpop.f32.mrb[4].mxu1 }
 0x1fb   : > { %v1287_v51 = vpop.f32.mrb[5].mxu1  ;;  %v710_v54 = vadd.f32 %v1153_v13, %v703_v50 }
 0x1fc   : > { %v706_v52 = vpop.f32.mrb[6].mxu1 }
 0x1fd   : > { %v1288_v53 = vpop.f32.mrb[7].mxu1  ;;  %v711_v56 = vadd.f32 %v1154_v14, %v706_v52 }
 0x201   : > { %v825_v55 = vpop.f32.mrb[8].mxu0 }
 0x202   : > { %v832_v57 = vadd.f32 %v825_v55, %v710_v54  ;;  %v1307_v58 = vpop.f32.mrb[9].mxu0 }
 0x203   : > { %v828_v59 = vpop.f32.mrb[10].mxu0 }
 0x204   : > { %v833_v60 = vadd.f32 %v828_v59, %v711_v56  ;;  %v1308_v61 = vpop.f32.mrb[11].mxu0 }
 0x21a   : > { %v939_v1 = vpop.f32.mrb[8].mxu1 }
 0x21b   : > { %v946_v63 = vadd.f32 %v939_v1, %v832_v57  ;;  %v1327_v0 = vpop.f32.mrb[9].mxu1 }
 0x21c   : > { %v942_v2 = vpop.f32.mrb[10].mxu1 }
 0x21d   : > { %v955_v3 = vadd.f32 %v1146_v62, %v946_v63  ;;  %v947_v13 = vadd.f32 %v942_v2, %v833_v60  ;;  %v1328_v4 = vpop.f32.mrb[11].mxu1 }
 0x21f   : > { %v957_v11 = vmax.f32 %v955_v3, 0.0  ;;  %v956_v14 = vadd.f32 %v1146_v62, %v947_v13 }
 0x221   : > { %959 = vst [vmem:[%s224_s10] sm:$0xff] %v957_v11  ;;  %v958_v5 = vmax.f32 %v956_v14, 0.0 }
 0x223   : > { %960 = vst [vmem:[%s224_s10 + $0x8] sm:$0xff] %v958_v5 }
 0x224 PF: > { %s15_s18 = sadd.s32 1, %s1394_s18  }
 0x225   : > { %p12_p4 = scmp.ge.s32.totalorder %s15_s18, 4  }
 0x227   :  { %14 = sbr.rel (!%p12_p4) target bundleno = 1 (0x1), region = 74 }

</bundles_post_ra>
